<compile_context>
chip_gen: v7x
topology: tpu7x:2x2x1
jax: 0.10.0
libtpu: 0.0.40
codegen_flags: <defaults>
</compile_context>

<pallas_src>
import math

import jax
import jax.numpy as jnp
from jax.experimental import pallas as pl
from jax.experimental.pallas import tpu as pltpu

# Problem sizes (small, consistent with the module's forward)
B = 2                 # batch
L = 8                 # n_site (sequence length)
C = 4                 # num_classes
E = 32                # embed_dim
H = 4                 # attention_heads
HD = E // H           # head dim
D_HID = 2 * E         # MLP hidden dim (d_hid = embed_dim * 2)
BL = B * L
GRP = 128             # lane-group width: each head of each projection owns one group
NEG_SLOPE = 0.01                 # F.leaky_relu default negative_slope
SCALE = 1.0 / math.sqrt(HD)      # MultiheadAttention q scaling (folded into W_q/b_q)

# ---- packed parameter slab layouts (built once in the wrapper) -------------
# Slab A (QKV): (E + 8, 3*H*GRP).
#   rows 0:E  -> W_{q,k,v}^T columns, head-padded: projection p, head h lives in
#                lanes (p*H + h)*GRP .. +HD (rest of the 128-lane group is zero).
#   row  E    -> matching packed bias row.
QKV_ROWS = E + 8
QKV_LANES = 3 * H * GRP          # 1536

# Slab B (rest): (632, 128).
R_WO = 0                         # rows 0:512  -> W_o^T head-padded (rows h*GRP..+HD), lanes 0:E
R_BO = H * GRP                   # row 512     -> b_o, lanes 0:E
R_W1 = R_BO + 8                  # rows 520:552-> W_1^T (E, D_HID), lanes 0:D_HID
R_B1 = R_W1 + E                  # row 552     -> b_1, lanes 0:D_HID
R_W2 = R_B1 + 8                  # rows 560:624-> W_2^T (D_HID, E), lanes 0:E
R_B2 = R_W2 + D_HID              # row 624     -> b_2, lanes 0:E
REST_ROWS = R_B2 + 8             # 632 (multiple of 8)
REST_LANES = 128


def selfattn_mlp_kernel(x_ref, qkv_ref, rest_ref, out_ref):
    x = x_ref[...]                                                     # (BL, E)

    # --- fused, head-padded QKV projection; bias row folded into the slab ---
    qkv = (jnp.dot(x, qkv_ref[0:E, :], preferred_element_type=jnp.float32)
           + qkv_ref[E:E + 1, :])                                      # (BL, 3*H*GRP)

    # --- per-head scores; contraction over the zero-padded 128-lane groups is exact ---
    scores = []
    for h in range(H):                                                 # static unroll
        qh = qkv[:, h * GRP:(h + 1) * GRP].reshape(B, L, GRP)
        kh = qkv[:, (H + h) * GRP:(H + h + 1) * GRP].reshape(B, L, GRP)
        scores.append(jnp.einsum('bqd,bkd->bqk', qh, kh,
                                 preferred_element_type=jnp.float32))  # (B, L, L)

    # --- one batched softmax over all heads x batches (exact division) ---
    s_all = jnp.concatenate(scores, axis=0)                            # (H*B, L, L)
    s_all = s_all - jnp.max(s_all, axis=-1, keepdims=True)
    e_all = jnp.exp(s_all)
    p_all = e_all / jnp.sum(e_all, axis=-1, keepdims=True)

    # --- per-head PV + out-projection accumulated against head-padded W_o^T ---
    a = x + rest_ref[R_BO:R_BO + 1, 0:E]                               # residual + b_o
    for h in range(H):
        vh = qkv[:, (2 * H + h) * GRP:(2 * H + h + 1) * GRP].reshape(B, L, GRP)
        ph = p_all[h * B:(h + 1) * B]                                  # (B, L, L)
        oh = jnp.einsum('bqk,bkd->bqd', ph, vh,
                        preferred_element_type=jnp.float32)            # (B, L, GRP)
        a = a + jnp.dot(oh.reshape(BL, GRP),
                        rest_ref[R_WO + h * GRP:R_WO + (h + 1) * GRP, 0:E],
                        preferred_element_type=jnp.float32)

    # --- PositionwiseFeedForward: w2(leaky_relu(w1(a))) + a, then outer + a ---
    h1 = (jnp.dot(a, rest_ref[R_W1:R_W1 + E, 0:D_HID],
                  preferred_element_type=jnp.float32)
          + rest_ref[R_B1:R_B1 + 1, 0:D_HID])
    h1 = jnp.where(h1 >= 0, h1, NEG_SLOPE * h1)
    f = (jnp.dot(h1, rest_ref[R_W2:R_W2 + D_HID, 0:E],
                 preferred_element_type=jnp.float32)
         + rest_ref[R_B2:R_B2 + 1, 0:E])
    out_ref[...] = f + 2.0 * a


def init_params(key):
    ks = jax.random.split(key, 10)
    s = 0.1
    return dict(
        w_emb=jax.random.normal(ks[0], (E, C), jnp.float32) * s,       # Linear(C, E).weight
        b_emb=jax.random.normal(ks[1], (E,), jnp.float32) * s,
        pos=jax.random.normal(ks[2], (L, E), jnp.float32) / math.sqrt(E),
        w_qkv=jax.random.normal(ks[3], (3 * E, E), jnp.float32) * s,   # in_proj_weight
        b_qkv=jax.random.normal(ks[4], (3 * E,), jnp.float32) * s,
        w_o=jax.random.normal(ks[5], (E, E), jnp.float32) * s,         # out_proj.weight
        b_o=jax.random.normal(ks[6], (E,), jnp.float32) * s,
        w_1=jax.random.normal(ks[7], (D_HID, E), jnp.float32) * s,     # Linear(E, 2E).weight
        b_1=jax.random.normal(ks[8], (D_HID,), jnp.float32) * s,
        w_2=jax.random.normal(ks[9], (E, D_HID), jnp.float32) * s,     # Linear(2E, E).weight
        b_2=jnp.zeros((E,), jnp.float32),
    )


def pack_params(p):
    """One-time wrapper-side packing of all weights/biases into two lane-dense slabs."""
    w_q, w_k, w_v = p['w_qkv'][:E], p['w_qkv'][E:2 * E], p['w_qkv'][2 * E:]
    b_q, b_k, b_v = p['b_qkv'][:E], p['b_qkv'][E:2 * E], p['b_qkv'][2 * E:]

    qkv_slab = jnp.zeros((QKV_ROWS, QKV_LANES), jnp.float32)
    for pi, (w, bvec, scl) in enumerate(((w_q, b_q, SCALE), (w_k, b_k, 1.0), (w_v, b_v, 1.0))):
        wt = w.T * scl                     # (E_in, E_out), q-scale folded into weights
        bs = bvec * scl
        for h in range(H):
            c0 = (pi * H + h) * GRP
            qkv_slab = qkv_slab.at[:E, c0:c0 + HD].set(wt[:, h * HD:(h + 1) * HD])
            qkv_slab = qkv_slab.at[E, c0:c0 + HD].set(bs[h * HD:(h + 1) * HD])

    rest = jnp.zeros((REST_ROWS, REST_LANES), jnp.float32)
    wo_t = p['w_o'].T                      # (E, E)
    for h in range(H):
        rest = rest.at[R_WO + h * GRP:R_WO + h * GRP + HD, :E].set(wo_t[h * HD:(h + 1) * HD, :])
    rest = rest.at[R_BO, :E].set(p['b_o'])
    rest = rest.at[R_W1:R_W1 + E, :D_HID].set(p['w_1'].T)
    rest = rest.at[R_B1, :D_HID].set(p['b_1'])
    rest = rest.at[R_W2:R_W2 + D_HID, :E].set(p['w_2'].T)
    rest = rest.at[R_B2, :E].set(p['b_2'])
    return qkv_slab, rest


def selfattn_mlp(tokens, p):
    # Embedding Linear(C, E) applied to one-hot == exact row gather of W_emb^T;
    # fold b_emb and the positional encoding in the wrapper (plain XLA prep).
    x = p['w_emb'].T[tokens] + p['b_emb'] + p['pos']                   # (B, L, E)
    x = x.reshape(BL, E).astype(jnp.float32)
    qkv_slab, rest_slab = pack_params(p)

    def full(shape):
        return pl.BlockSpec(shape, lambda i: (0,) * len(shape))

    out2d = pl.pallas_call(
        selfattn_mlp_kernel,
        out_shape=jax.ShapeDtypeStruct((BL, E), jnp.float32),
        grid=(1,),                                   # single step: batch folded into rows
        in_specs=[
            full((BL, E)),                           # x (embedded + pos + b_emb)
            full((QKV_ROWS, QKV_LANES)),             # packed head-padded QKV weights + bias row
            full((REST_ROWS, REST_LANES)),           # packed W_o / W_1 / W_2 + bias rows
        ],
        out_specs=full((BL, E)),
        compiler_params=pltpu.CompilerParams(dimension_semantics=("arbitrary",)),
    )(x, qkv_slab, rest_slab)
    return out2d.reshape(B, L, E)


def selfattn_mlp_ref(tokens, p):
    """Pure-JAX reference mirroring the PyTorch forward (float32, exact softmax)."""
    onehot = jax.nn.one_hot(tokens, C, dtype=jnp.float32)
    x = onehot @ p['w_emb'].T + p['b_emb'] + p['pos']                  # (B, L, E)
    qkv = x @ p['w_qkv'].T + p['b_qkv']
    q, k, v = qkv[..., :E], qkv[..., E:2 * E], qkv[..., 2 * E:]

    def split(t):  # (B, L, E) -> (B, H, L, HD)
        return t.reshape(B, L, H, HD).transpose(0, 2, 1, 3)

    qh, kh, vh = split(q) / math.sqrt(HD), split(k), split(v)
    s = jnp.einsum('bhqd,bhkd->bhqk', qh, kh)
    pm = jax.nn.softmax(s, axis=-1)
    attn = jnp.einsum('bhqk,bhkd->bhqd', pm, vh).transpose(0, 2, 1, 3).reshape(B, L, E)
    attn = attn @ p['w_o'].T + p['b_o']
    a = attn + x
    h1 = a @ p['w_1'].T + p['b_1']
    h1 = jnp.where(h1 >= 0, h1, NEG_SLOPE * h1)
    f = h1 @ p['w_2'].T + p['b_2']
    return f + a + a


if __name__ == "__main__":
    key = jax.random.PRNGKey(0)
    k_tok, k_par = jax.random.split(key)
    tokens = jax.random.randint(k_tok, (B, L), 0, C, dtype=jnp.int32)
    params = init_params(k_par)

    out = jax.block_until_ready(selfattn_mlp(tokens, params))
    ref = jax.block_until_ready(selfattn_mlp_ref(tokens, params))

    assert out.shape == (B, L, E)
    # Softmax is now exact (no approx reciprocal); remaining tolerance covers
    # MXU f32-path / reordering rounding between kernel and XLA reference.
    assert jnp.allclose(out, ref, atol=2e-3, rtol=2e-3), "mismatch vs reference"

    print("KERNEL_OK")
</pallas_src>

<mosaic_0001>
module attributes {stable_mosaic.version = 11 : i64} {
  func.func @selfattn_mlp_kernel(%arg0: i32, %arg1: memref<16x32xf32, #tpu.memory_space<vmem>>, %arg2: memref<40x1536xf32, #tpu.memory_space<vmem>>, %arg3: memref<632x128xf32, #tpu.memory_space<vmem>>, %arg4: memref<16x32xf32, #tpu.memory_space<vmem>>) attributes {dimension_semantics = [#tpu.dimension_semantics<arbitrary>], iteration_bounds = array<i64: 1>, scalar_prefetch = 0 : i64, scratch_operands = 0 : i64, tpu.core_type = #tpu.core_type<tc>, window_params = [{pipeline_mode = #tpu.pipeline_mode<synchronous>, transform_indices = @transform_0, window_bounds = array<i64: 16, 32>}, {pipeline_mode = #tpu.pipeline_mode<synchronous>, transform_indices = @transform_1, window_bounds = array<i64: 40, 1536>}, {pipeline_mode = #tpu.pipeline_mode<synchronous>, transform_indices = @transform_2, window_bounds = array<i64: 632, 128>}, {pipeline_mode = #tpu.pipeline_mode<synchronous>, transform_indices = @transform_3, window_bounds = array<i64: 16, 32>}]} {
    %c0 = arith.constant 0 : index
    %c0_0 = arith.constant 0 : index
    %0 = vector.load %arg1[%c0, %c0_0] : memref<16x32xf32, #tpu.memory_space<vmem>>, vector<16x32xf32>
    %c0_1 = arith.constant 0 : index
    %c0_2 = arith.constant 0 : index
    %1 = vector.load %arg2[%c0_1, %c0_2] : memref<40x1536xf32, #tpu.memory_space<vmem>>, vector<32x1536xf32>
    %cst = arith.constant dense<0.000000e+00> : vector<16x1536xf32>
    %2 = tpu.matmul %0, %1, %cst {dimension_numbers = #tpu.dot_dimension_numbers<[1], [0], [0], [1], [0, 0, 1, 1], [], []>} : vector<16x32xf32>, vector<32x1536xf32>, vector<16x1536xf32> -> vector<16x1536xf32>
    %c32 = arith.constant 32 : index
    %c0_3 = arith.constant 0 : index
    %3 = vector.load %arg2[%c32, %c0_3] : memref<40x1536xf32, #tpu.memory_space<vmem>>, vector<1x1536xf32>
    %4 = vector.broadcast %3 : vector<1x1536xf32> to vector<16x1536xf32>
    %5 = arith.addf %2, %4 : vector<16x1536xf32>
    %6 = vector.extract_strided_slice %5 {offsets = [0, 0], sizes = [16, 128], strides = [1, 1]} : vector<16x1536xf32> to vector<16x128xf32>
    %7 = vector.shape_cast %6 : vector<16x128xf32> to vector<2x8x128xf32>
    %8 = vector.extract_strided_slice %5 {offsets = [0, 512], sizes = [16, 128], strides = [1, 1]} : vector<16x1536xf32> to vector<16x128xf32>
    %9 = vector.shape_cast %8 : vector<16x128xf32> to vector<2x8x128xf32>
    "tpu.trace_start"() <{level = 10 : i32, message = "bqd,bkd->bqk"}> : () -> ()
    %cst_4 = arith.constant dense<0.000000e+00> : vector<2x8x8xf32>
    %10 = tpu.matmul %7, %9, %cst_4 {dimension_numbers = #tpu.dot_dimension_numbers<[2], [2], [1], [1], [0, 0, 0, 1, 1, 1], [0], [0]>} : vector<2x8x128xf32>, vector<2x8x128xf32>, vector<2x8x8xf32> -> vector<2x8x8xf32>
    "tpu.trace_stop"() : () -> ()
    %11 = vector.extract_strided_slice %5 {offsets = [0, 128], sizes = [16, 128], strides = [1, 1]} : vector<16x1536xf32> to vector<16x128xf32>
    %12 = vector.shape_cast %11 : vector<16x128xf32> to vector<2x8x128xf32>
    %13 = vector.extract_strided_slice %5 {offsets = [0, 640], sizes = [16, 128], strides = [1, 1]} : vector<16x1536xf32> to vector<16x128xf32>
    %14 = vector.shape_cast %13 : vector<16x128xf32> to vector<2x8x128xf32>
    "tpu.trace_start"() <{level = 10 : i32, message = "bqd,bkd->bqk"}> : () -> ()
    %cst_5 = arith.constant dense<0.000000e+00> : vector<2x8x8xf32>
    %15 = tpu.matmul %12, %14, %cst_5 {dimension_numbers = #tpu.dot_dimension_numbers<[2], [2], [1], [1], [0, 0, 0, 1, 1, 1], [0], [0]>} : vector<2x8x128xf32>, vector<2x8x128xf32>, vector<2x8x8xf32> -> vector<2x8x8xf32>
    "tpu.trace_stop"() : () -> ()
    %16 = vector.extract_strided_slice %5 {offsets = [0, 256], sizes = [16, 128], strides = [1, 1]} : vector<16x1536xf32> to vector<16x128xf32>
    %17 = vector.shape_cast %16 : vector<16x128xf32> to vector<2x8x128xf32>
    %18 = vector.extract_strided_slice %5 {offsets = [0, 768], sizes = [16, 128], strides = [1, 1]} : vector<16x1536xf32> to vector<16x128xf32>
    %19 = vector.shape_cast %18 : vector<16x128xf32> to vector<2x8x128xf32>
    "tpu.trace_start"() <{level = 10 : i32, message = "bqd,bkd->bqk"}> : () -> ()
    %cst_6 = arith.constant dense<0.000000e+00> : vector<2x8x8xf32>
    %20 = tpu.matmul %17, %19, %cst_6 {dimension_numbers = #tpu.dot_dimension_numbers<[2], [2], [1], [1], [0, 0, 0, 1, 1, 1], [0], [0]>} : vector<2x8x128xf32>, vector<2x8x128xf32>, vector<2x8x8xf32> -> vector<2x8x8xf32>
    "tpu.trace_stop"() : () -> ()
    %21 = vector.extract_strided_slice %5 {offsets = [0, 384], sizes = [16, 128], strides = [1, 1]} : vector<16x1536xf32> to vector<16x128xf32>
    %22 = vector.shape_cast %21 : vector<16x128xf32> to vector<2x8x128xf32>
    %23 = vector.extract_strided_slice %5 {offsets = [0, 896], sizes = [16, 128], strides = [1, 1]} : vector<16x1536xf32> to vector<16x128xf32>
    %24 = vector.shape_cast %23 : vector<16x128xf32> to vector<2x8x128xf32>
    "tpu.trace_start"() <{level = 10 : i32, message = "bqd,bkd->bqk"}> : () -> ()
    %cst_7 = arith.constant dense<0.000000e+00> : vector<2x8x8xf32>
    %25 = tpu.matmul %22, %24, %cst_7 {dimension_numbers = #tpu.dot_dimension_numbers<[2], [2], [1], [1], [0, 0, 0, 1, 1, 1], [0], [0]>} : vector<2x8x128xf32>, vector<2x8x128xf32>, vector<2x8x8xf32> -> vector<2x8x8xf32>
    "tpu.trace_stop"() : () -> ()
    %26 = tpu.concatenate %10, %15, %20, %25 in 0 : vector<2x8x8xf32>, vector<2x8x8xf32>, vector<2x8x8xf32>, vector<2x8x8xf32> -> vector<8x8x8xf32>
    %cst_8 = arith.constant dense<0xFF800000> : vector<8x8xf32>
    %27 = vector.multi_reduction <maximumf>, %26, %cst_8 [2] : vector<8x8x8xf32> to vector<8x8xf32>
    %28 = vector.shape_cast %27 : vector<8x8xf32> to vector<8x8x1xf32>
    %29 = vector.broadcast %28 : vector<8x8x1xf32> to vector<8x8x8xf32>
    %30 = arith.subf %26, %29 : vector<8x8x8xf32>
    %31 = math.exp %30 : vector<8x8x8xf32>
    %cst_9 = arith.constant dense<0.000000e+00> : vector<8x8xf32>
    %32 = vector.multi_reduction <add>, %31, %cst_9 [2] : vector<8x8x8xf32> to vector<8x8xf32>
    %33 = vector.shape_cast %32 : vector<8x8xf32> to vector<8x8x1xf32>
    %34 = vector.broadcast %33 : vector<8x8x1xf32> to vector<8x8x8xf32>
    %35 = arith.divf %31, %34 : vector<8x8x8xf32>
    %c512 = arith.constant 512 : index
    %c0_10 = arith.constant 0 : index
    %36 = vector.load %arg3[%c512, %c0_10] : memref<632x128xf32, #tpu.memory_space<vmem>>, vector<1x32xf32>
    %37 = vector.broadcast %36 : vector<1x32xf32> to vector<16x32xf32>
    %38 = arith.addf %0, %37 : vector<16x32xf32>
    %39 = vector.extract_strided_slice %5 {offsets = [0, 1024], sizes = [16, 128], strides = [1, 1]} : vector<16x1536xf32> to vector<16x128xf32>
    %40 = vector.shape_cast %39 : vector<16x128xf32> to vector<2x8x128xf32>
    %41 = vector.extract_strided_slice %35 {offsets = [0, 0, 0], sizes = [2, 8, 8], strides = [1, 1, 1]} : vector<8x8x8xf32> to vector<2x8x8xf32>
    "tpu.trace_start"() <{level = 10 : i32, message = "bqk,bkd->bqd"}> : () -> ()
    %cst_11 = arith.constant dense<0.000000e+00> : vector<2x8x128xf32>
    %42 = tpu.matmul %41, %40, %cst_11 {dimension_numbers = #tpu.dot_dimension_numbers<[2], [1], [1], [2], [0, 0, 0, 1, 1, 2], [0], [0]>} : vector<2x8x8xf32>, vector<2x8x128xf32>, vector<2x8x128xf32> -> vector<2x8x128xf32>
    "tpu.trace_stop"() : () -> ()
    %43 = vector.shape_cast %42 : vector<2x8x128xf32> to vector<16x128xf32>
    %c0_12 = arith.constant 0 : index
    %c0_13 = arith.constant 0 : index
    %44 = vector.load %arg3[%c0_12, %c0_13] : memref<632x128xf32, #tpu.memory_space<vmem>>, vector<128x32xf32>
    %cst_14 = arith.constant dense<0.000000e+00> : vector<16x32xf32>
    %45 = tpu.matmul %43, %44, %cst_14 {dimension_numbers = #tpu.dot_dimension_numbers<[1], [0], [0], [1], [0, 0, 1, 1], [], []>} : vector<16x128xf32>, vector<128x32xf32>, vector<16x32xf32> -> vector<16x32xf32>
    %46 = arith.addf %38, %45 : vector<16x32xf32>
    %47 = vector.extract_strided_slice %5 {offsets = [0, 1152], sizes = [16, 128], strides = [1, 1]} : vector<16x1536xf32> to vector<16x128xf32>
    %48 = vector.shape_cast %47 : vector<16x128xf32> to vector<2x8x128xf32>
    %49 = vector.extract_strided_slice %35 {offsets = [2, 0, 0], sizes = [2, 8, 8], strides = [1, 1, 1]} : vector<8x8x8xf32> to vector<2x8x8xf32>
    "tpu.trace_start"() <{level = 10 : i32, message = "bqk,bkd->bqd"}> : () -> ()
    %cst_15 = arith.constant dense<0.000000e+00> : vector<2x8x128xf32>
    %50 = tpu.matmul %49, %48, %cst_15 {dimension_numbers = #tpu.dot_dimension_numbers<[2], [1], [1], [2], [0, 0, 0, 1, 1, 2], [0], [0]>} : vector<2x8x8xf32>, vector<2x8x128xf32>, vector<2x8x128xf32> -> vector<2x8x128xf32>
    "tpu.trace_stop"() : () -> ()
    %51 = vector.shape_cast %50 : vector<2x8x128xf32> to vector<16x128xf32>
    %c128 = arith.constant 128 : index
    %c0_16 = arith.constant 0 : index
    %52 = vector.load %arg3[%c128, %c0_16] : memref<632x128xf32, #tpu.memory_space<vmem>>, vector<128x32xf32>
    %cst_17 = arith.constant dense<0.000000e+00> : vector<16x32xf32>
    %53 = tpu.matmul %51, %52, %cst_17 {dimension_numbers = #tpu.dot_dimension_numbers<[1], [0], [0], [1], [0, 0, 1, 1], [], []>} : vector<16x128xf32>, vector<128x32xf32>, vector<16x32xf32> -> vector<16x32xf32>
    %54 = arith.addf %46, %53 : vector<16x32xf32>
    %55 = vector.extract_strided_slice %5 {offsets = [0, 1280], sizes = [16, 128], strides = [1, 1]} : vector<16x1536xf32> to vector<16x128xf32>
    %56 = vector.shape_cast %55 : vector<16x128xf32> to vector<2x8x128xf32>
    %57 = vector.extract_strided_slice %35 {offsets = [4, 0, 0], sizes = [2, 8, 8], strides = [1, 1, 1]} : vector<8x8x8xf32> to vector<2x8x8xf32>
    "tpu.trace_start"() <{level = 10 : i32, message = "bqk,bkd->bqd"}> : () -> ()
    %cst_18 = arith.constant dense<0.000000e+00> : vector<2x8x128xf32>
    %58 = tpu.matmul %57, %56, %cst_18 {dimension_numbers = #tpu.dot_dimension_numbers<[2], [1], [1], [2], [0, 0, 0, 1, 1, 2], [0], [0]>} : vector<2x8x8xf32>, vector<2x8x128xf32>, vector<2x8x128xf32> -> vector<2x8x128xf32>
    "tpu.trace_stop"() : () -> ()
    %59 = vector.shape_cast %58 : vector<2x8x128xf32> to vector<16x128xf32>
    %c256 = arith.constant 256 : index
    %c0_19 = arith.constant 0 : index
    %60 = vector.load %arg3[%c256, %c0_19] : memref<632x128xf32, #tpu.memory_space<vmem>>, vector<128x32xf32>
    %cst_20 = arith.constant dense<0.000000e+00> : vector<16x32xf32>
    %61 = tpu.matmul %59, %60, %cst_20 {dimension_numbers = #tpu.dot_dimension_numbers<[1], [0], [0], [1], [0, 0, 1, 1], [], []>} : vector<16x128xf32>, vector<128x32xf32>, vector<16x32xf32> -> vector<16x32xf32>
    %62 = arith.addf %54, %61 : vector<16x32xf32>
    %63 = vector.extract_strided_slice %5 {offsets = [0, 1408], sizes = [16, 128], strides = [1, 1]} : vector<16x1536xf32> to vector<16x128xf32>
    %64 = vector.shape_cast %63 : vector<16x128xf32> to vector<2x8x128xf32>
    %65 = vector.extract_strided_slice %35 {offsets = [6, 0, 0], sizes = [2, 8, 8], strides = [1, 1, 1]} : vector<8x8x8xf32> to vector<2x8x8xf32>
    "tpu.trace_start"() <{level = 10 : i32, message = "bqk,bkd->bqd"}> : () -> ()
    %cst_21 = arith.constant dense<0.000000e+00> : vector<2x8x128xf32>
    %66 = tpu.matmul %65, %64, %cst_21 {dimension_numbers = #tpu.dot_dimension_numbers<[2], [1], [1], [2], [0, 0, 0, 1, 1, 2], [0], [0]>} : vector<2x8x8xf32>, vector<2x8x128xf32>, vector<2x8x128xf32> -> vector<2x8x128xf32>
    "tpu.trace_stop"() : () -> ()
    %67 = vector.shape_cast %66 : vector<2x8x128xf32> to vector<16x128xf32>
    %c384 = arith.constant 384 : index
    %c0_22 = arith.constant 0 : index
    %68 = vector.load %arg3[%c384, %c0_22] : memref<632x128xf32, #tpu.memory_space<vmem>>, vector<128x32xf32>
    %cst_23 = arith.constant dense<0.000000e+00> : vector<16x32xf32>
    %69 = tpu.matmul %67, %68, %cst_23 {dimension_numbers = #tpu.dot_dimension_numbers<[1], [0], [0], [1], [0, 0, 1, 1], [], []>} : vector<16x128xf32>, vector<128x32xf32>, vector<16x32xf32> -> vector<16x32xf32>
    %70 = arith.addf %62, %69 : vector<16x32xf32>
    %c520 = arith.constant 520 : index
    %c0_24 = arith.constant 0 : index
    %71 = vector.load %arg3[%c520, %c0_24] : memref<632x128xf32, #tpu.memory_space<vmem>>, vector<32x64xf32>
    %cst_25 = arith.constant dense<0.000000e+00> : vector<16x64xf32>
    %72 = tpu.matmul %70, %71, %cst_25 {dimension_numbers = #tpu.dot_dimension_numbers<[1], [0], [0], [1], [0, 0, 1, 1], [], []>} : vector<16x32xf32>, vector<32x64xf32>, vector<16x64xf32> -> vector<16x64xf32>
    %c552 = arith.constant 552 : index
    %c0_26 = arith.constant 0 : index
    %73 = vector.load %arg3[%c552, %c0_26] : memref<632x128xf32, #tpu.memory_space<vmem>>, vector<1x64xf32>
    %74 = vector.broadcast %73 : vector<1x64xf32> to vector<16x64xf32>
    %75 = arith.addf %72, %74 : vector<16x64xf32>
    %cst_27 = arith.constant 0.000000e+00 : f32
    %76 = vector.broadcast %cst_27 : f32 to vector<16x64xf32>
    %77 = arith.cmpf oge, %75, %76 : vector<16x64xf32>
    %cst_28 = arith.constant 0.00999999977 : f32
    %78 = vector.broadcast %cst_28 : f32 to vector<16x64xf32>
    %79 = arith.mulf %78, %75 : vector<16x64xf32>
    %80 = arith.select %77, %75, %79 : vector<16x64xi1>, vector<16x64xf32>
    %c560 = arith.constant 560 : index
    %c0_29 = arith.constant 0 : index
    %81 = vector.load %arg3[%c560, %c0_29] : memref<632x128xf32, #tpu.memory_space<vmem>>, vector<64x32xf32>
    %cst_30 = arith.constant dense<0.000000e+00> : vector<16x32xf32>
    %82 = tpu.matmul %80, %81, %cst_30 {dimension_numbers = #tpu.dot_dimension_numbers<[1], [0], [0], [1], [0, 0, 1, 1], [], []>} : vector<16x64xf32>, vector<64x32xf32>, vector<16x32xf32> -> vector<16x32xf32>
    %c624 = arith.constant 624 : index
    %c0_31 = arith.constant 0 : index
    %83 = vector.load %arg3[%c624, %c0_31] : memref<632x128xf32, #tpu.memory_space<vmem>>, vector<1x32xf32>
    %84 = vector.broadcast %83 : vector<1x32xf32> to vector<16x32xf32>
    %85 = arith.addf %82, %84 : vector<16x32xf32>
    %cst_32 = arith.constant 2.000000e+00 : f32
    %86 = vector.broadcast %cst_32 : f32 to vector<16x32xf32>
    %87 = arith.mulf %86, %70 : vector<16x32xf32>
    %88 = arith.addf %85, %87 : vector<16x32xf32>
    %c0_33 = arith.constant 0 : index
    %c0_34 = arith.constant 0 : index
    %89 = vector.load %arg4[%c0_33, %c0_34] : memref<16x32xf32, #tpu.memory_space<vmem>>, vector<16x32xf32>
    tpu.vector_store %arg4[%c0_33, %c0_34], %88 {strides = array<i32>} : memref<16x32xf32, #tpu.memory_space<vmem>>, vector<16x32xf32>,
    return
  }
  func.func @transform_0(%arg0: i32) -> (i32, i32) {
    %c0_i32 = arith.constant 0 : i32
    %c0_i32_0 = arith.constant 0 : i32
    %c0_i32_1 = arith.constant 0 : i32
    return %c0_i32, %c0_i32_0 : i32, i32
  }
  func.func @transform_1(%arg0: i32) -> (i32, i32) {
    %c0_i32 = arith.constant 0 : i32
    %c0_i32_0 = arith.constant 0 : i32
    %c0_i32_1 = arith.constant 0 : i32
    return %c0_i32, %c0_i32_0 : i32, i32
  }
  func.func @transform_2(%arg0: i32) -> (i32, i32) {
    %c0_i32 = arith.constant 0 : i32
    %c0_i32_0 = arith.constant 0 : i32
    %c0_i32_1 = arith.constant 0 : i32
    return %c0_i32, %c0_i32_0 : i32, i32
  }
  func.func @transform_3(%arg0: i32) -> (i32, i32) {
    %c0_i32 = arith.constant 0 : i32
    %c0_i32_0 = arith.constant 0 : i32
    %c0_i32_1 = arith.constant 0 : i32
    return %c0_i32, %c0_i32_0 : i32, i32
  }
}

</mosaic_0001>

<bundles_post_ra>
// kernel: tpu_custom_call.1
= control target key start
LH: loop header
LB: loop body
LE: loop exit
PB: predicated region body
PF: predicated region fallthrough
CT: control target
= control target key end

     0   :  { %8 = vsyncpa [#allocation3], 0  ;;  %s3506_s0 = inlined_call_operand.hbm [shape: f32[16,32], index: 0, kind: input, shape index: {}]   ;;  %s3507_s1 = inlined_call_operand.hbm [shape: f32[40,1536], index: 1, kind: input, shape index: {}]   ;;  %s3508_s2 = inlined_call_operand.hbm [shape: f32[632,128], index: 2, kind: input, shape index: {}]   ;;  %s3509_s3 = inlined_call_operand.hbm [shape: f32[16,32], index: 3, kind: output, shape index: {}]  }
   0x1   :  { %9 = vsyncpa [#allocation6], 0 }
   0x2   :  { %10 = vsyncpa [#allocation4], 0  ;;  %s3213_s12 = smov [#allocation5]   ;;  %s3119_s16 = scalar_lea.hbm %s3507_s1, 7680 }
   0x3   :  { %s28_s13 = sshll.u32 %s3213_s12, 4  ;;  %p3120_p0 = scmp.ne.s32.totalorder %s3507_s1, %s3119_s16  ;;  %s29_s13 = int_to_ptr.vmem [resolvable:$true] %s28_s13 }
   0x4   :  { %p3123_p1 = scmp.lt.u32.totalorder %s3119_s16, %s3507_s1 }
   0x6   :  { %p3125_p2 = pnand %p3123_p1, %p3120_p0 }
   0x8   :  { %3128 = shalt.err (!%p3125_p2)
}
   0x9   :  { %s3129_s21 = scalar_lea.vmem %s29_s13, 7680  ;;  %p3134_p4 = scmp.lt.s32.totalorder %s29_s13, %s29_s13 }
   0xa   :  { %p3130_p3 = scmp.ne.s32.totalorder %s29_s13, %s3129_s21  ;;  %p3135_p5 = scmp.lt.s32.totalorder %s3129_s21, %s3129_s21 }
   0xc   :  { %p3136_p6 = por %p3135_p5, %p3134_p4 }
   0xe   :  { %p3137_p7 = pnand %p3136_p6, %p3130_p3 }
  0x10   :  { %3140 = shalt.err (!%p3137_p7)
}
  0x11   :  { %s3214_s22 = smov 1536   ;;  %s3215_s23 = smov 96  }
  0x12   :  { %34 = dma.hbm_to_vmem [thread:$0]  %s3507_s1, 7680, %s29_s13, [#allocation6], %s3214_s22, %s3214_s22, %s3215_s23  }
  0x13   :  { %s3216_s26 = smov [#allocation2]   ;;  %s3141_s30 = scalar_lea.hbm %s3506_s0, 256 }
  0x14   :  { %s16_s27 = sshll.u32 %s3216_s26, 4  ;;  %p3142_p8 = scmp.ne.s32.totalorder %s3506_s0, %s3141_s30  ;;  %s17_s27 = int_to_ptr.vmem [resolvable:$true] %s16_s27 }
  0x15   :  { %p3145_p9 = scmp.lt.u32.totalorder %s3141_s30, %s3506_s0 }
  0x17   :  { %p3147_p10 = pnand %p3145_p9, %p3142_p8 }
  0x19   :  { %3150 = shalt.err (!%p3147_p10)
}
  0x1a   :  { %s3151_s8 = scalar_lea.vmem %s17_s27, 256  ;;  %p3156_p12 = scmp.lt.s32.totalorder %s17_s27, %s17_s27 }
  0x1b   :  { %p3152_p11 = scmp.ne.s32.totalorder %s17_s27, %s3151_s8  ;;  %p3157_p13 = scmp.lt.s32.totalorder %s3151_s8, %s3151_s8 }
  0x1d   :  { %p3158_p0 = por %p3157_p13, %p3156_p12 }
  0x1f   :  { %p3159_p1 = pnand %p3158_p0, %p3152_p11 }
  0x21   :  { %3162 = shalt.err (!%p3159_p1)
}
  0x22   :  { %s3217_s1 = smov 128   ;;  %s3218_s9 = smov 8  }
  0x23   :  { %22 = dma.hbm_to_vmem [thread:$0]  %s3506_s0, 256, %s17_s27, [#allocation3], %s3217_s1, %s3217_s1, %s3218_s9  }
  0x24   :  { %s3219_s12 = smov [#allocation7]   ;;  %s3163_s16 = scalar_lea.hbm %s3508_s2, 10112 }
  0x25   :  { %s40_s13 = sshll.u32 %s3219_s12, 4  ;;  %p3164_p2 = scmp.ne.s32.totalorder %s3508_s2, %s3163_s16  ;;  %s41_s13 = int_to_ptr.vmem [resolvable:$true] %s40_s13 }
  0x26   :  { %p3167_p3 = scmp.lt.u32.totalorder %s3163_s16, %s3508_s2 }
  0x28   :  { %p3169_p4 = pnand %p3167_p3, %p3164_p2 }
  0x2a   :  { %3172 = shalt.err (!%p3169_p4)
}
  0x2b   :  { %s3173_s21 = scalar_lea.vmem %s41_s13, 10112  ;;  %p3178_p6 = scmp.lt.s32.totalorder %s41_s13, %s41_s13 }
  0x2c   :  { %p3174_p5 = scmp.ne.s32.totalorder %s41_s13, %s3173_s21  ;;  %p3179_p7 = scmp.lt.s32.totalorder %s3173_s21, %s3173_s21 }
  0x2e   :  { %p3180_p8 = por %p3179_p7, %p3178_p6 }
  0x30   :  { %p3181_p9 = pnand %p3180_p8, %p3174_p5 }
  0x32   :  { %3184 = shalt.err (!%p3181_p9)
}
  0x33   :  { %46 = dma.hbm_to_vmem [thread:$0]  %s3508_s2, 10112, %s41_s13, [#allocation6], %s3217_s1, %s3217_s1, %s3218_s9  }
  0x34   :  { %3207 = dma.done.wait [#allocation3], 256  }
  0x35   :  { %3208 = vsyncadd [#allocation3], 4294967040 }
  0x36   :  { %3209 = dma.done.wait [#allocation6], 17792  }
  0x37   :  { %3210 = vsyncadd [#allocation6], 4294949504  ;;  %v3220_v0 = vmov 0.0   ;;  %v59_v1 = vld [vmem:[#allocation5 + $0x8] sm:$0xff]  ;;  %v58_v6 = vld [vmem:[#allocation5] sm:$0xff]  ;;  %vm174_vm0 = vcmask 261120  }
  0x38   :  { %245 = vmatprep.mubr.f32.mxu1 %v3220_v0  ;;  %399 = vmatprep.mubr.f32.mxu0 %v3220_v0  ;;  %v71_v2 = vld [vmem:[#allocation5 + $0x68] sm:$0xff]  ;;  %v70_v7 = vld [vmem:[#allocation5 + $0x60] sm:$0xff]  ;;  %v61_v24 = vld [vmem:[#allocation5 + $0x18] sm:$0xff]  ;;  %vm3221_vm1 = vmmov 0   ;;  %vm1203_vm2 = vcmask 64512   ;;  %vm2364_vm5 = vcmask 523264  }
  0x39   :  { %v63_v3 = vld [vmem:[#allocation5 + $0x28] sm:$0xff]  ;;  %v2867_v4 = vpack.c.bf16 %v71_v2, %v59_v1  ;;  %v2869_v9 = vpack.c.bf16 %v70_v7, %v58_v6  ;;  %v62_v10 = vld [vmem:[#allocation5 + $0x20] sm:$0xff]  ;;  %v73_v26 = vld [vmem:[#allocation5 + $0x78] sm:$0xff]  ;;  %s3222_s2 = smov [#allocation8]  }
  0x3a   :  { %v75_v5 = vld [vmem:[#allocation5 + $0x88] sm:$0xff]  ;;  %v74_v11 = vld [vmem:[#allocation5 + $0x80] sm:$0xff]  ;;  %v60_v27 = vld [vmem:[#allocation5 + $0x10] sm:$0xff]  ;;  %v2875_v29 = vpack.c.bf16 %v73_v26, %v61_v24  ;;  %s2457_s23 = sshll.u32 %s3222_s2, 4  ;;  %s2458_s23 = int_to_ptr.vmem [resolvable:$true] %s2457_s23 }
  0x3b   :  { %v2883_v8 = vpack.c.bf16 %v75_v5, %v63_v3  ;;  %v83_v12 = vld [vmem:[#allocation5 + $0xc8] sm:$0xff]  ;;  %2868 = vmatprep.subr.bf16.mxu1 %v2867_v4  ;;  %v2885_v13 = vpack.c.bf16 %v74_v11, %v62_v10  ;;  %v82_v19 = vld [vmem:[#allocation5 + $0xc0] sm:$0xff]  ;;  %v72_v28 = vld [vmem:[#allocation5 + $0x70] sm:$0xff]  ;;  %s3185_s24 = scalar_lea.vmem %s2458_s23, 256  ;;  %p3190_p11 = scmp.lt.s32.totalorder %s2458_s23, %s2458_s23 }
  0x3c   :  { %v95_v14 = vld [vmem:[#allocation5 + $0x128] sm:$0xff]  ;;  %2870 = vmatpush1.bf16.msra.mxu1 %v2869_v9  ;;  %v94_v20 = vld [vmem:[#allocation5 + $0x120] sm:$0xff]  ;;  %v85_v30 = vld [vmem:[#allocation5 + $0xd8] sm:$0xff]  ;;  %v2877_v33 = vpack.c.bf16 %v72_v28, %v60_v27  ;;  %p3186_p10 = scmp.ne.s32.totalorder %s2458_s23, %s3185_s24  ;;  %p3191_p12 = scmp.lt.s32.totalorder %s3185_s24, %s3185_s24 }
  0x3d   :  { %v87_v15 = vld [vmem:[#allocation5 + $0xe8] sm:$0xff]  ;;  %2884 = vmatprep.subr.bf16.mxu0 %v2883_v8  ;;  %v2871_v17 = vpack.c.bf16 %v95_v14, %v83_v12  ;;  %v86_v21 = vld [vmem:[#allocation5 + $0xe0] sm:$0xff]  ;;  %v2873_v22 = vpack.c.bf16 %v94_v20, %v82_v19  ;;  %v97_v31 = vld [vmem:[#allocation5 + $0x138] sm:$0xff]  ;;  %v114_v12 = vlaneseq }
  0x3e   :  { %v99_v16 = vld [vmem:[#allocation5 + $0x148] sm:$0xff]  ;;  %2886 = vmatpush1.bf16.msra.mxu0 %v2885_v13  ;;  %v98_v23 = vld [vmem:[#allocation5 + $0x140] sm:$0xff]  ;;  %v3287_v32 = vld [vmem:[#allocation2] sm:$0xff]  ;;  %v2879_v37 = vpack.c.bf16 %v97_v31, %v85_v30  ;;  %p3192_p13 = por %p3191_p12, %p3190_p11 }
  0x3f   :  { %v2887_v18 = vpack.c.bf16 %v99_v16, %v87_v15  ;;  %2872 = vmatprep.subr.bf16.mxu1 %v2871_v17  ;;  %v2889_v25 = vpack.c.bf16 %v98_v23, %v86_v21  ;;  %v84_v34 = vld [vmem:[#allocation5 + $0xd0] sm:$0xff]  ;;  %v3289_v36 = vld [vmem:[#allocation2 + $0x8] sm:$0xff]  ;;  %v67_v41 = vld [vmem:[#allocation5 + $0x48] sm:$0xff]  ;;  %v3331_v13 = vshrl.u32 %v114_v12, 7 }
  0x40   :  { %2874 = vmatpush1.bf16.msra.mxu1 %v2873_v22  ;;  %v96_v35 = vld [vmem:[#allocation5 + $0x130] sm:$0xff]  ;;  %v65_v38 = vld [vmem:[#allocation5 + $0x38] sm:$0xff]  ;;  %v79_v42 = vld [vmem:[#allocation5 + $0xa8] sm:$0xff]  ;;  %p3193_p0 = pnand %p3192_p13, %p3186_p10 }
  0x41   :  { %2888 = vmatprep.subr.bf16.mxu0 %v2887_v18  ;;  %2876 = vmatprep.subr.bf16.mxu1 %v2875_v29  ;;  %v77_v39 = vld [vmem:[#allocation5 + $0x98] sm:$0xff]  ;;  %v64_v40 = vld [vmem:[#allocation5 + $0x30] sm:$0xff]  ;;  %v2881_v43 = vpack.c.bf16 %v96_v35, %v84_v34  ;;  %v2899_v44 = vpack.c.bf16 %v79_v42, %v67_v41  ;;  %v66_v45 = vld [vmem:[#allocation5 + $0x40] sm:$0xff]  ;;  %v132_v17 = vsub.s32 4, %v3331_v13  ;;  %v116_v18 = vsub.s32 0, %v3331_v13 }
  0x42   :  { %2890 = vmatpush1.bf16.msra.mxu0 %v2889_v25  ;;  %v78_v46 = vld [vmem:[#allocation5 + $0xa0] sm:$0xff]  ;;  %v91_v47 = vld [vmem:[#allocation5 + $0x108] sm:$0xff]  ;;  %v2891_v48 = vpack.c.bf16 %v77_v39, %v65_v38  ;;  %v76_v49 = vld [vmem:[#allocation5 + $0x90] sm:$0xff]  ;;  %v136_v20 = vsub.s32 5, %v3331_v13  ;;  %v120_v24 = vsub.s32 1, %v3331_v13  ;;  %v140_v42 = vsub.s32 6, %v3331_v13 }
  0x43   :  { %2470 = vmatmul.mubr.msk.f32.vlgmr.msra.gmra.mrb[0].mxu1 %vm174_vm0, %v3287_v32  ;;  %v89_v50 = vld [vmem:[#allocation5 + $0xf8] sm:$0xff]  ;;  %v2901_v51 = vpack.c.bf16 %v78_v46, %v66_v45  ;;  %v103_v52 = vld [vmem:[#allocation5 + $0x168] sm:$0xff]  ;;  %2900 = vmatprep.subr.bf16.mxu0 %v2899_v44  ;;  %v90_v55 = vld [vmem:[#allocation5 + $0x100] sm:$0xff]  ;;  %v2893_v58 = vpack.c.bf16 %v76_v49, %v64_v40  ;;  %v124_v45 = vsub.s32 2, %v3331_v13  ;;  %v144_v46 = vsub.s32 7, %v3331_v13 }
  0x44   :  { %2878 = vmatpush1.bf16.msra.mxu1 %v2877_v33  ;;  %251 = vmatprep.mubr.f32.mxu1 %v3220_v0  ;;  %v101_v53 = vld [vmem:[#allocation5 + $0x158] sm:$0xff]  ;;  %v2903_v54 = vpack.c.bf16 %v103_v52, %v91_v47  ;;  %v102_v56 = vld [vmem:[#allocation5 + $0x160] sm:$0xff]  ;;  %v88_v60 = vld [vmem:[#allocation5 + $0xf0] sm:$0xff] }
  0x45   :  { %2474 = vmatmul.mubr.msk.f32.vlgmr.msra.gmra.mrb[0].mxu0 %vm174_vm0, %v3287_v32  ;;  %2880 = vmatprep.subr.bf16.mxu1 %v2879_v37  ;;  %v2905_v57 = vpack.c.bf16 %v102_v56, %v90_v55  ;;  %v2895_v59 = vpack.c.bf16 %v101_v53, %v89_v50  ;;  %v100_v61 = vld [vmem:[#allocation5 + $0x150] sm:$0xff]  ;;  %v69_v62 = vld [vmem:[#allocation5 + $0x58] sm:$0xff]  ;;  %v128_v55 = vsub.s32 3, %v3331_v13 }
  0x46   :  { %405 = vmatprep.mubr.f32.mxu0 %v3220_v0  ;;  %2902 = vmatpush1.bf16.msra.mxu0 %v2901_v51  ;;  %v81_v63 = vld [vmem:[#allocation5 + $0xb8] sm:$0xff]  ;;  %v2897_v1 = vpack.c.bf16 %v100_v61, %v88_v60  ;;  %v68_v3 = vld [vmem:[#allocation5 + $0x50] sm:$0xff] }
  0x47   :  { %2471 = vmatmul.mubr.msk.f32.gmra.mrb[2].mxu1 %vm174_vm0, %v3289_v36  ;;  %2904 = vmatprep.subr.bf16.mxu0 %v2903_v54  ;;  %v2907_v2 = vpack.c.bf16 %v81_v63, %v69_v62  ;;  %v80_v4 = vld [vmem:[#allocation5 + $0xb0] sm:$0xff]  ;;  %v93_v5 = vld [vmem:[#allocation5 + $0x118] sm:$0xff] }
  0x48   :  { %2882 = vmatpush1.bf16.msra.mxu1 %v2881_v43  ;;  %322 = vmatprep.mubr.f32.mxu1 %v3220_v0  ;;  %v105_v6 = vld [vmem:[#allocation5 + $0x178] sm:$0xff]  ;;  %v2909_v7 = vpack.c.bf16 %v80_v4, %v68_v3  ;;  %v92_v9 = vld [vmem:[#allocation5 + $0x110] sm:$0xff] }
  0x49   :  { %2475 = vmatmul.mubr.msk.f32.gmra.mrb[2].mxu0 %vm174_vm0, %v3289_v36  ;;  %2892 = vmatprep.subr.bf16.mxu1 %v2891_v48  ;;  %v2911_v8 = vpack.c.bf16 %v105_v6, %v93_v5  ;;  %v104_v10 = vld [vmem:[#allocation5 + $0x170] sm:$0xff] }
  0x4a   :  { %553 = vmatprep.mubr.f32.mxu0 %v3220_v0  ;;  %2906 = vmatpush1.bf16.msra.mxu0 %v2905_v57  ;;  %v2913_v11 = vpack.c.bf16 %v104_v10, %v92_v9  ;;  %v107_v14 = vld [vmem:[#allocation5 + $0x180] ss:$8 sm:$0xf] }
  0x4b   :  { %2472 = vmatmul.mubr.msk.f32.vlgmr.msra.gmra.mrb[4].mxu1 %vm174_vm0, %v3287_v32  ;;  %2617 = vmatprep.subr.mxu0 %v3220_v0  ;;  %v108_v15 = vld [vmem:[#allocation5 + $0x180] ss:$8 sm:$0xf0] }
  0x4c   :  { %2894 = vmatpush1.bf16.msra.mxu1 %v2893_v58  ;;  %328 = vmatprep.mubr.f32.mxu1 %v3220_v0  ;;  %v3333_v16 = vor.u32 %v108_v15, %v107_v14  ;;  %v3346_v37 = vld [vmem:[#allocation5 + $0x1c0] ss:$8 sm:$0xf] }
  0x4d   :  { %2896 = vmatprep.subr.bf16.mxu1 %v2895_v59  ;;  %2478 = vmatmul.mubr.msk.f32.vlgmr.msra.gmra.mrb[4].mxu0 %vm174_vm0, %v3287_v32  ;;  %v153_v43 = vrot.slane %v3346_v37, %v120_v24  ;;  %v149_v3 = vrot.slane %v3346_v37, %v116_v18 }
  0x4e   :  { %559 = vmatprep.mubr.f32.mxu0 %v3220_v0  ;;  %v133_v19 = vrot.slane %v3333_v16, %v132_v17  ;;  %v117_v21 = vrot.slane %v3333_v16, %v116_v18  ;;  %v137_v27 = vrot.slane %v3333_v16, %v136_v20  ;;  %v141_v52 = vrot.slane %v3333_v16, %v140_v42 }
  0x4f   :  { %2473 = vmatmul.mubr.msk.f32.gmra.mrb[6].mxu1 %vm174_vm0, %v3289_v36  ;;  %v125_v54 = vrot.slane %v3333_v16, %v124_v45  ;;  %v145_v56 = vrot.slane %v3333_v16, %v144_v46 }
  0x50   :  { %2898 = vmatpush1.bf16.msra.mxu1 %v2897_v1  ;;  %476 = vmatprep.mubr.f32.mxu1 %v3220_v0  ;;  %v129_v1 = vrot.slane %v3333_v16, %v128_v55 }
  0x51   :  { %2908 = vmatprep.subr.bf16.mxu1 %v2907_v2  ;;  %2479 = vmatmul.mubr.msk.f32.gmra.mrb[6].mxu0 %vm174_vm0, %v3289_v36 }
  0x52   :  { %2619 = vmatprep.mubr.msk.f32.mxu0 %vm3221_vm1, %v3220_v0 }
  0x53   :  { %2476 = vmatmul.mubr.msk.f32.vlgmr.msra.gmra.mrb[8].mxu1 %vm174_vm0, %v3287_v32 }
  0x54   :  { %482 = vmatprep.mubr.f32.mxu1 %v3220_v0  ;;  %2910 = vmatpush1.bf16.msra.mxu1 %v2909_v7  ;;  %v157_v7 = vrot.slane %v3346_v37, %v124_v45 }
  0x55   :  { %2912 = vmatprep.subr.bf16.mxu1 %v2911_v8 }
  0x57   :  { %2477 = vmatmul.mubr.msk.f32.gmra.mrb[10].mxu1 %vm174_vm0, %v3289_v36 }
  0x58   :  { %2914 = vmatpush1.bf16.msra.mxu1 %v2913_v11  ;;  %630 = vmatprep.mubr.f32.mxu1 %v3220_v0 }
  0x59   :  { %2622 = vmatprep.subr.mxu1 %v3220_v0 }
  0x5b   :  { %2480 = vmatmul.mubr.msk.f32.vlgmr.msra.gmra.mrb[12].mxu1 %vm174_vm0, %v3287_v32  ;;  %v121_v32 = vrot.slane %v3333_v16, %v120_v24 }
  0x5c   :  { %636 = vmatprep.mubr.f32.mxu1 %v3220_v0 }
  0x5f   :  { %2481 = vmatmul.mubr.msk.f32.gmra.mrb[14].mxu1 %vm174_vm0, %v3289_v36 }
  0x60   :  { %2624 = vmatprep.mubr.msk.f32.mxu1 %vm3221_vm1, %v3220_v0 }
 0x116   :  { %v247_v22 = vpop.f32.mrb[0].mxu1 }
 0x117   :  { %v249_v25 = vpop.f32.mrb[1].mxu1  ;;  %v248_v29 = vadd.f32 %v247_v22, %v117_v21 }
 0x118   :  { %v401_v23 = vpop.f32.mrb[0].mxu0  ;;  %v250_v40 = vadd.f32 %v249_v25, %v121_v32 }
 0x119   :  { %v402_v26 = vadd.f32 %v401_v23, %v133_v19  ;;  %v403_v28 = vpop.f32.mrb[1].mxu0 }
 0x11a   :  { %v253_v30 = vpop.f32.mrb[2].mxu1  ;;  %v404_v34 = vadd.f32 %v403_v28, %v137_v27 }
 0x11b   :  { %2618 = vmatpush3.xpose.msra.mxu0 %v402_v26  ;;  %v255_v33 = vpop.f32.mrb[3].mxu1  ;;  %v254_v38 = vadd.f32 %v253_v30, %v117_v21 }
 0x11c   :  { %v407_v31 = vpop.f32.mrb[2].mxu0  ;;  %2627 = vmatprep.subr.mxu0 %v3220_v0  ;;  %v256_v50 = vadd.f32 %v255_v33, %v121_v32 }
 0x11d   :  { %v408_v35 = vadd.f32 %v407_v31, %v133_v19  ;;  %v409_v36 = vpop.f32.mrb[3].mxu0 }
 0x11e   :  { %2620 = vmatmul.mubr.f32.vlgmr.msra.gmra.mrb[8].mxu0 %v248_v29  ;;  %v324_v39 = vpop.f32.mrb[4].mxu1  ;;  %v410_v44 = vadd.f32 %v409_v36, %v137_v27 }
 0x11f   :  { %2623 = vmatpush3.xpose.msra.mxu1 %v408_v35  ;;  %2628 = vmatpush3.xpose.msra.mxu0 %v404_v34  ;;  %v326_v41 = vpop.f32.mrb[5].mxu1  ;;  %v325_v63 = vadd.f32 %v324_v39, %v125_v54 }
 0x120   :  { %2629 = vmatprep.mubr.msk.f32.mxu0 %vm3221_vm1, %v3220_v0  ;;  %2632 = vmatprep.subr.mxu1 %v3220_v0  ;;  %v555_v47 = vpop.f32.mrb[4].mxu0  ;;  %v327_v8 = vadd.f32 %v326_v41, %v129_v1 }
 0x121   :  { %2637 = vmatprep.subr.mxu0 %v3220_v0  ;;  %v557_v49 = vpop.f32.mrb[5].mxu0  ;;  %v556_v10 = vadd.f32 %v555_v47, %v149_v3 }
 0x122   :  { %2625 = vmatmul.mubr.f32.vlgmr.msra.gmra.mrb[16].mxu1 %v254_v38  ;;  %2630 = vmatmul.mubr.f32.vlgmr.msra.gmra.mrb[10].mxu0 %v250_v40  ;;  %v330_v48 = vpop.f32.mrb[6].mxu1  ;;  %v3362_v53 = vadd.f32 %v557_v49, %v153_v43 }
 0x123   :  { %2633 = vmatpush3.xpose.msra.mxu1 %v410_v44  ;;  %2634 = vmatprep.mubr.msk.f32.mxu1 %vm3221_vm1, %v3220_v0  ;;  %v332_v51 = vpop.f32.mrb[7].mxu1  ;;  %v331_v9 = vadd.f32 %v330_v48, %v125_v54 }
 0x124   :  { %2639 = vmatprep.mubr.msk.f32.mxu0 %vm3221_vm1, %v3220_v0  ;;  %2642 = vmatprep.subr.mxu1 %v3220_v0  ;;  %v561_v57 = vpop.f32.mrb[6].mxu0  ;;  %v333_v15 = vadd.f32 %v332_v51, %v129_v1 }
 0x125   :  { %v563_v59 = vpop.f32.mrb[7].mxu0  ;;  %v562_v16 = vadd.f32 %v561_v57, %v149_v3 }
 0x126   :  { %2635 = vmatmul.mubr.f32.vlgmr.msra.gmra.mrb[18].mxu1 %v256_v50  ;;  %v478_v58 = vpop.f32.mrb[8].mxu1  ;;  %v3369_v62 = vadd.f32 %v563_v59, %v153_v43 }
 0x127   :  { %2644 = vmatprep.mubr.msk.f32.mxu1 %vm3221_vm1, %v3220_v0  ;;  %v479_v60 = vadd.f32 %v478_v58, %v141_v52  ;;  %v480_v61 = vpop.f32.mrb[9].mxu1 }
 0x128   :  { %v481_v2 = vadd.f32 %v480_v61, %v145_v56 }
 0x129   :  { %2638 = vmatpush3.xpose.msra.mxu0 %v479_v60 }
 0x12a   :  { %2647 = vmatprep.subr.mxu0 %v3220_v0  ;;  %v484_v4 = vpop.f32.mrb[10].mxu1 }
 0x12b   :  { %v485_v5 = vadd.f32 %v484_v4, %v141_v52  ;;  %v486_v6 = vpop.f32.mrb[11].mxu1 }
 0x12c   :  { %2640 = vmatmul.mubr.f32.vlgmr.msra.gmra.mrb[12].mxu0 %v325_v63  ;;  %v487_v11 = vadd.f32 %v486_v6, %v145_v56 }
 0x12d   :  { %2648 = vmatpush3.xpose.msra.mxu0 %v481_v2  ;;  %2649 = vmatprep.mubr.msk.f32.mxu0 %vm3221_vm1, %v3220_v0 }
 0x12e   :  { %2643 = vmatpush3.xpose.msra.mxu1 %v485_v5  ;;  %2657 = vmatprep.subr.mxu0 %v3220_v0  ;;  %v632_v12 = vpop.f32.mrb[12].mxu1 }
 0x12f   :  { %2652 = vmatprep.subr.mxu1 %v3220_v0  ;;  %v3383_v14 = vadd.f32 %v632_v12, %v157_v7  ;;  %v3392_v17 = vpop.f32.mrb[13].mxu1 }
 0x130   :  { %2650 = vmatmul.mubr.f32.vlgmr.msra.gmra.mrb[14].mxu0 %v327_v8 }
 0x131   :  { %2645 = vmatmul.mubr.f32.vlgmr.msra.gmra.mrb[20].mxu1 %v331_v9  ;;  %2658 = vmatpush3.msra.mxu0 %v556_v10 }
 0x132   :  { %2653 = vmatpush3.xpose.msra.mxu1 %v487_v11  ;;  %2654 = vmatprep.mubr.msk.f32.mxu1 %vm3221_vm1, %v3220_v0  ;;  %v638_v18 = vpop.f32.mrb[14].mxu1 }
 0x133   :  { %2662 = vmatprep.subr.mxu1 %v3220_v0  ;;  %2659 = vmatprep.mubr.msk.f32.mxu0 %vm3221_vm1, %v3220_v0  ;;  %v3394_v19 = vadd.f32 %v638_v18, %v157_v7  ;;  %v3396_v20 = vpop.f32.mrb[15].mxu1 }
 0x135   :  { %2655 = vmatmul.mubr.f32.vlgmr.msra.gmra.mrb[22].mxu1 %v333_v15 }
 0x136   :  { %2663 = vmatpush3.msra.mxu1 %v562_v16  ;;  %2664 = vmatprep.mubr.msk.f32.mxu1 %vm3221_vm1, %v3220_v0 }
 0x1f1   :  { %v709_v21 = vpop.f32.mrb[8].mxu0 }
 0x1f2   :  { %v1204_v22 = vsel %vm1203_vm2, %v709_v21, -inf  ;;  %v2621_v23 = vpop.f32.mrb[9].mxu0 }
 0x1f3   :  { %1205 = vmax.xlane.f32.xlu0 %v1204_v22 }
 0x1f5   :  { %v779_v24 = vpop.f32.mrb[16].mxu1  ;;  %v849_v25 = vpop.f32.mrb[10].mxu0 }
 0x1f6   :  { %v2631_v26 = vpop.f32.mrb[11].mxu0  ;;  %v1207_v27 = vsel %vm1203_vm2, %v779_v24, -inf  ;;  %v2626_v28 = vpop.f32.mrb[17].mxu1  ;;  %v1210_v31 = vsel %vm1203_vm2, %v849_v25, -inf }
 0x1f7   :  { %1208 = vmax.xlane.f32.xlu0 %v1207_v27 }
 0x1f9   :  { %v3400_v29 = vpop.f32.mrb[18].mxu1 }
 0x1fa   :  { %v2636_v30 = vpop.f32.mrb[19].mxu1  ;;  %v1213_v3 = vsel %vm1203_vm2, %v3400_v29, -inf }
 0x1fb   :  { %1211 = vmax.xlane.f32.xlu0 %v1210_v31 }
 0x1ff   :  { %v989_v32 = vpop.f32.mrb[12].mxu0 }
 0x200   :  { %v1216_v33 = vsel %vm1203_vm2, %v989_v32, -inf  ;;  %v2641_v34 = vpop.f32.mrb[13].mxu0 }
 0x201   :  { %1217 = vmax.xlane.f32.xlu0 %v1216_v33 }
 0x203   :  { %v1129_v35 = vpop.f32.mrb[14].mxu0 }
 0x204   :  { %v1222_v36 = vsel %vm1203_vm2, %v1129_v35, -inf  ;;  %v2651_v38 = vpop.f32.mrb[15].mxu0  ;;  %v1059_v39 = vpop.f32.mrb[20].mxu1 }
 0x205   :  { %1223 = vmax.xlane.f32.xlu0 %v1222_v36  ;;  %v2646_v40 = vpop.f32.mrb[21].mxu1  ;;  %v1219_v5 = vsel %vm1203_vm2, %v1059_v39, -inf  ;;  %v1445_v38 = vld [vmem:[#allocation7] sm:$0xff] }
 0x206   :  { %v1447_v40 = vld [vmem:[#allocation7 + $0x10] sm:$0xff] }
 0x208   :  { %v3405_v41 = vpop.f32.mrb[22].mxu1 }
 0x209   :  { %v2656_v42 = vpop.f32.mrb[23].mxu1  ;;  %v1225_v7 = vsel %vm1203_vm2, %v3405_v41, -inf }
 0x20a   :  { %v1448_v42 = vld [vmem:[#allocation7 + $0x18] sm:$0xff] }
 0x280   :  { %v1206_v43 = vpop.xlane.xlu0 %1205 }
 0x281   :  { %v1228_v44 = vsub.f32 %v709_v21, %v1206_v43  ;;  %v2919_v43 = vpack.c.bf16 %v1448_v42, %v1447_v40 }
 0x283   :  { %v1236_v45 = vmul.f32 1.442695, %v1228_v44  ;;  %v1449_v44 = vld [vmem:[#allocation7 + $0x20] sm:$0xff] }
 0x284   :  { %v1209_v46 = vpop.xlane.xlu0 %1208 }
 0x285   :  { %3085 = vpow2.f32 %v1236_v45  ;;  %v1229_v47 = vsub.f32 %v779_v24, %v1209_v46  ;;  %v1450_v45 = vld [vmem:[#allocation7 + $0x28] sm:$0xff] }
 0x286   :  { %v2923_v46 = vpack.c.bf16 %v1450_v45, %v1449_v44 }
 0x287   :  { %v1238_v48 = vmul.f32 1.442695, %v1229_v47  ;;  %v1451_v47 = vld [vmem:[#allocation7 + $0x30] sm:$0xff] }
 0x288   :  { %v1212_v49 = vpop.xlane.xlu0 %1211 }
 0x289   :  { %3087 = vpow2.f32 %v1238_v48  ;;  %v1230_v50 = vsub.f32 %v849_v25, %v1212_v49  ;;  %v1452_v48 = vld [vmem:[#allocation7 + $0x38] sm:$0xff] }
 0x28a   :  { %v2927_v49 = vpack.c.bf16 %v1452_v48, %v1451_v47  ;;  %v1699_v48 = vld [vmem:[#allocation7 + $0xf8] sm:$0xff] }
 0x28b   :  { %v1240_v51 = vmul.f32 1.442695, %v1230_v50  ;;  %v1453_v50 = vld [vmem:[#allocation7 + $0x40] sm:$0xff] }
 0x28d   :  { %3089 = vpow2.f32 %v1240_v51  ;;  %v1454_v51 = vld [vmem:[#allocation7 + $0x48] sm:$0xff] }
 0x28e   :  { %v1218_v54 = vpop.xlane.xlu0 %1217 }
 0x28f   :  { %v3086_v52 = vpop.eup %3085  ;;  %v1232_v56 = vsub.f32 %v989_v32, %v1218_v54  ;;  %v1455_v54 = vld [vmem:[#allocation7 + $0x50] sm:$0xff] }
 0x290   :  { %v1252_v57 = vsel %vm1203_vm2, %v3086_v52, 0.0 }
 0x291   :  { %1253 = vadd.xlane.f32.xlu1 %v1252_v57  ;;  %v1244_v58 = vmul.f32 1.442695, %v1232_v56  ;;  %v1456_v56 = vld [vmem:[#allocation7 + $0x58] sm:$0xff] }
 0x292   :  { %v1224_v60 = vpop.xlane.xlu0 %1223  ;;  %v2935_v57 = vpack.c.bf16 %v1456_v56, %v1455_v54 }
 0x293   :  { %v3088_v59 = vpop.eup %3087  ;;  %3091 = vpow2.f32 %v1244_v58  ;;  %v1234_v61 = vsub.f32 %v1129_v35, %v1224_v60  ;;  %v1457_v58 = vld [vmem:[#allocation7 + $0x60] sm:$0xff] }
 0x294   :  { %v1255_v63 = vsel %vm1203_vm2, %v3088_v59, 0.0 }
 0x295   :  { %1256 = vadd.xlane.f32.xlu1 %v1255_v63  ;;  %v1248_v1 = vmul.f32 1.442695, %v1234_v61  ;;  %v1459_v61 = vld [vmem:[#allocation7 + $0x70] sm:$0xff]  ;;  %v1460_v63 = vld [vmem:[#allocation7 + $0x78] sm:$0xff] }
 0x297   :  { %v3409_v2 = vpop.eup %3089  ;;  %3093 = vpow2.f32 %v1248_v1  ;;  %v2943_v1 = vpack.c.bf16 %v1460_v63, %v1459_v61 }
 0x298   :  { %v1258_v4 = vsel %vm1203_vm2, %v3409_v2, 0.0 }
 0x299   :  { %1214 = vmax.xlane.f32.xlu1 %v1213_v3  ;;  %1259 = vadd.xlane.f32.xlu0 %v1258_v4  ;;  %v1684_v3 = vld [vmem:[#allocation7 + $0x80] sm:$0xff]  ;;  %v1685_v4 = vld [vmem:[#allocation7 + $0x88] sm:$0xff] }
 0x29d   :  { %1220 = vmax.xlane.f32.xlu1 %v1219_v5  ;;  %v3416_v6 = vpop.eup %3091  ;;  %v1686_v5 = vld [vmem:[#allocation7 + $0x90] sm:$0xff] }
 0x29e   :  { %v1264_v8 = vsel %vm1203_vm2, %v3416_v6, 0.0 }
 0x29f   :  { %1265 = vadd.xlane.f32.xlu0 %v1264_v8  ;;  %v1687_v8 = vld [vmem:[#allocation7 + $0x98] sm:$0xff] }
 0x2a1   :  { %1226 = vmax.xlane.f32.xlu1 %v1225_v7  ;;  %v3422_v9 = vpop.eup %3093  ;;  %v2947_v7 = vpack.c.bf16 %v1685_v4, %v1684_v3  ;;  %v1928_v3 = vld [vmem:[#allocation7 + $0x128] sm:$0xff] }
 0x2a2   :  { %v1270_v10 = vsel %vm1203_vm2, %v3422_v9, 0.0 }
 0x2a3   :  { %1271 = vadd.xlane.f32.xlu0 %v1270_v10  ;;  %v2951_v10 = vpack.c.bf16 %v1687_v8, %v1686_v5  ;;  %2948 = vmatprep.subr.bf16.mxu0 %v2947_v7  ;;  %v1929_v8 = vld [vmem:[#allocation7 + $0x130] sm:$0xff] }
 0x31e   :  { %v1254_v11 = vpop.xlane.xlu1 %1253 }
 0x31f   :  { %3095 = vrcp.f32 %v1254_v11  ;;  %v1688_v11 = vld [vmem:[#allocation7 + $0xa0] sm:$0xff] }
 0x322   :  { %v1257_v12 = vpop.xlane.xlu1 %1256 }
 0x323   :  { %3097 = vrcp.f32 %v1257_v12  ;;  %v1689_v12 = vld [vmem:[#allocation7 + $0xa8] sm:$0xff] }
 0x326   :  { %v1215_v15 = vpop.xlane.xlu1 %1214 }
 0x327   :  { %v1231_v16 = vsub.f32 %v3400_v29, %v1215_v15  ;;  %v2955_v15 = vpack.c.bf16 %v1689_v12, %v1688_v11 }
 0x329   :  { %v3096_v18 = vpop.eup %3095  ;;  %v1242_v21 = vmul.f32 1.442695, %v1231_v16  ;;  %v1690_v16 = vld [vmem:[#allocation7 + $0xb0] sm:$0xff] }
 0x32a   :  { %v1277_v22 = vmul.f32 %v3096_v18, %v3086_v52  ;;  %v1221_v23 = vpop.xlane.xlu1 %1220  ;;  %v2931_v52 = vpack.c.bf16 %v1454_v51, %v1453_v50  ;;  %v1691_v18 = vld [vmem:[#allocation7 + $0xb8] sm:$0xff]  ;;  %v1924_v50 = vld [vmem:[#allocation7 + $0x108] sm:$0xff] }
 0x32b   :  { %3099 = vpow2.f32 %v1242_v21  ;;  %v1233_v24 = vsub.f32 %v1059_v39, %v1221_v23  ;;  %v1446_v39 = vld [vmem:[#allocation7 + $0x8] sm:$0xff]  ;;  %v2959_v21 = vpack.c.bf16 %v1691_v18, %v1690_v16  ;;  %v1931_v16 = vld [vmem:[#allocation7 + $0x140] sm:$0xff] }
 0x32c   :  { %2660 = vmatmul.mubr.msk.f32.vlgmr.msra.gmra.mrb[16].mxu0 %vm1203_vm2, %v1277_v22  ;;  %v1692_v22 = vld [vmem:[#allocation7 + $0xc0] sm:$0xff]  ;;  %v1693_v23 = vld [vmem:[#allocation7 + $0xc8] sm:$0xff] }
 0x32d   :  { %v3098_v25 = vpop.eup %3097  ;;  %v1246_v26 = vmul.f32 1.442695, %v1233_v24  ;;  %2950 = vmatpush3.bf16.msra.mxu0 %v2947_v7  ;;  %v2963_v24 = vpack.c.bf16 %v1693_v23, %v1692_v22  ;;  %v1932_v18 = vld [vmem:[#allocation7 + $0x148] sm:$0xff] }
 0x32e   :  { %v1279_v27 = vmul.f32 %v3098_v25, %v3088_v59  ;;  %v1227_v28 = vpop.xlane.xlu1 %1226  ;;  %v1458_v59 = vld [vmem:[#allocation7 + $0x68] sm:$0xff]  ;;  %2952 = vmatprep.subr.bf16.mxu0 %v2951_v10  ;;  %v1694_v25 = vld [vmem:[#allocation7 + $0xd0] sm:$0xff]  ;;  %v2995_v22 = vpack.c.bf16 %v1932_v18, %v1931_v16  ;;  %v2356_v16 = vld [vmem:[#allocation7 + $0x258] sm:$0xff] }
 0x32f   :  { %3101 = vpow2.f32 %v1246_v26  ;;  %v1235_v30 = vsub.f32 %v3405_v41, %v1227_v28  ;;  %v2915_v41 = vpack.c.bf16 %v1446_v39, %v1445_v38  ;;  %v2939_v60 = vpack.c.bf16 %v1458_v59, %v1457_v58  ;;  %v1695_v26 = vld [vmem:[#allocation7 + $0xd8] sm:$0xff]  ;;  %v1260_v28 = vpop.xlane.xlu0 %1259  ;;  %v1925_v58 = vld [vmem:[#allocation7 + $0x110] sm:$0xff] }
 0x330   :  { %2665 = vmatmul.mubr.msk.f32.vlgmr.msra.gmra.mrb[24].mxu1 %vm1203_vm2, %v1279_v27  ;;  %v2967_v27 = vpack.c.bf16 %v1695_v26, %v1694_v25  ;;  %v1926_v59 = vld [vmem:[#allocation7 + $0x118] sm:$0xff] }
 0x331   :  { %v1250_v31 = vmul.f32 1.442695, %v1235_v30  ;;  %2916 = vmatprep.subr.bf16.mxu1 %v2915_v41  ;;  %2954 = vmatpush3.bf16.msra.mxu0 %v2951_v10  ;;  %v2983_v61 = vpack.c.bf16 %v1926_v59, %v1925_v58  ;;  %v1930_v10 = vld [vmem:[#allocation7 + $0x138] sm:$0xff]  ;;  %v2482_v58 = vld [vmem:[#allocation7 + $0x200] ss:$0 sm:$0xff] }
 0x332   :  { %2918 = vmatpush3.bf16.msra.mxu1 %v2915_v41  ;;  %2956 = vmatprep.subr.bf16.mxu0 %v2955_v15  ;;  %v2991_v12 = vpack.c.bf16 %v1930_v10, %v1929_v8  ;;  %v1934_v25 = vld [vmem:[#allocation7 + $0x158] sm:$0xff] }
 0x333   :  { %3103 = vpow2.f32 %v1250_v31  ;;  %2920 = vmatprep.subr.bf16.mxu1 %v2919_v43  ;;  %v1266_v31 = vpop.xlane.xlu0 %1265  ;;  %v3117_v59 = vld [vmem:[#allocation2 + $0x8] sm:$0xff] }
 0x334   :  { %3105 = vrcp.f32 %v1260_v28 }
 0x335   :  { %v3430_v29 = vpop.eup %3099  ;;  %2958 = vmatpush3.bf16.msra.mxu0 %v2955_v15 }
 0x336   :  { %v1261_v32 = vsel %vm1203_vm2, %v3430_v29, 0.0  ;;  %2922 = vmatpush3.bf16.msra.mxu1 %v2919_v43  ;;  %2960 = vmatprep.subr.bf16.mxu0 %v2959_v21 }
 0x337   :  { %1262 = vadd.xlane.f32.xlu1 %v1261_v32  ;;  %2924 = vmatprep.subr.bf16.mxu1 %v2923_v46  ;;  %v1272_v42 = vpop.xlane.xlu0 %1271 }
 0x339   :  { %v3434_v33 = vpop.eup %3101  ;;  %2962 = vmatpush3.bf16.msra.mxu0 %v2959_v21 }
 0x33a   :  { %v1267_v34 = vsel %vm1203_vm2, %v3434_v33, 0.0  ;;  %2926 = vmatpush3.bf16.msra.mxu1 %v2923_v46  ;;  %2964 = vmatprep.subr.bf16.mxu0 %v2963_v24 }
 0x33b   :  { %1268 = vadd.xlane.f32.xlu1 %v1267_v34  ;;  %2928 = vmatprep.subr.bf16.mxu1 %v2927_v49 }
 0x33d   :  { %v3438_v35 = vpop.eup %3103  ;;  %2966 = vmatpush3.bf16.msra.mxu0 %v2963_v24  ;;  %v1933_v24 = vld [vmem:[#allocation7 + $0x150] sm:$0xff] }
 0x33e   :  { %v1273_v36 = vsel %vm1203_vm2, %v3438_v35, 0.0  ;;  %2930 = vmatpush3.bf16.msra.mxu1 %v2927_v49  ;;  %2968 = vmatprep.subr.bf16.mxu0 %v2967_v27  ;;  %v3106_v38 = vpop.eup %3105 }
 0x33f   :  { %1274 = vadd.xlane.f32.xlu1 %v1273_v36  ;;  %2932 = vmatprep.subr.bf16.mxu1 %v2931_v52  ;;  %v1281_v41 = vmul.f32 %v3106_v38, %v3409_v2  ;;  %v1938_v38 = vld [vmem:[#allocation7 + $0x178] sm:$0xff] }
 0x341   :  { %2970 = vmatpush3.bf16.msra.mxu0 %v2967_v27  ;;  %v2999_v27 = vpack.c.bf16 %v1934_v25, %v1933_v24 }
 0x342   :  { %2934 = vmatpush3.bf16.msra.mxu1 %v2931_v52  ;;  %v2255_v52 = vld [vmem:[#allocation7 + $0x208] sm:$0xff] }
 0x343   :  { %2936 = vmatprep.subr.bf16.mxu1 %v2935_v57 }
 0x346   :  { %2938 = vmatpush3.bf16.msra.mxu1 %v2935_v57 }
 0x347   :  { %2940 = vmatprep.subr.bf16.mxu1 %v2939_v60 }
 0x34a   :  { %2942 = vmatpush3.bf16.msra.mxu1 %v2939_v60 }
 0x34b   :  { %2944 = vmatprep.subr.bf16.mxu1 %v2943_v1 }
 0x34e   :  { %2946 = vmatpush3.bf16.msra.mxu1 %v2943_v1  ;;  %v1927_v1 = vld [vmem:[#allocation7 + $0x120] sm:$0xff] }
 0x34f   :  { %2702 = vmatprep.subr.mxu1 %v3220_v0  ;;  %v2987_v5 = vpack.c.bf16 %v1928_v3, %v1927_v1 }
 0x3c4   :  { %v1263_v30 = vpop.xlane.xlu1 %1262 }
 0x3c5   :  { %3107 = vrcp.f32 %v1263_v30  ;;  %v1935_v30 = vld [vmem:[#allocation7 + $0x160] sm:$0xff] }
 0x3c6   :  { %3109 = vrcp.f32 %v1266_v31  ;;  %v1936_v31 = vld [vmem:[#allocation7 + $0x168] sm:$0xff] }
 0x3c8   :  { %v1269_v36 = vpop.xlane.xlu1 %1268 }
 0x3c9   :  { %3111 = vrcp.f32 %v1269_v36  ;;  %v1937_v36 = vld [vmem:[#allocation7 + $0x170] sm:$0xff] }
 0x3ca   :  { %3113 = vrcp.f32 %v1272_v42 }
 0x3cf   :  { %v3108_v43 = vpop.eup %3107 }
 0x3d0   :  { %v1283_v44 = vmul.f32 %v3108_v43, %v3430_v29  ;;  %v3110_v45 = vpop.eup %3109  ;;  %v161_v29 = vrot.slane %v3346_v37, %v128_v55  ;;  %v2164_v43 = vld [vmem:[#allocation7 + $0x190] sm:$0xff] }
 0x3d1   :  { %v1285_v2 = vmul.f32 %v3110_v45, %v3416_v6  ;;  %v2166_v45 = vld [vmem:[#allocation7 + $0x1a0] sm:$0xff] }
 0x3d2   :  { %v635_v6 = vadd.f32 %v3392_v17, %v161_v29  ;;  %v641_v55 = vadd.f32 %v3396_v20, %v161_v29  ;;  %v1923_v20 = vld [vmem:[#allocation7 + $0x100] sm:$0xff]  ;;  %v2168_v29 = vld [vmem:[#allocation7 + $0x1b0] sm:$0xff] }
 0x3d3   :  { %v2979_v51 = vpack.c.bf16 %v1924_v50, %v1923_v20  ;;  %v2257_v50 = vld [vmem:[#allocation7 + $0x218] sm:$0xff] }
 0x3ff   :  { %v1368_v32 = vpop.f32.mrb[16].mxu0 }
 0x400   :  { %v2661_v34 = vpop.f32.mrb[17].mxu0  ;;  %2699 = vmatprep.mubr.f32.mxu1 %v1368_v32 }
 0x401   :  { %v3003_v34 = vpack.c.bf16 %v1936_v31, %v1935_v30 }
 0x403   :  { %v1441_v39 = vpop.f32.mrb[24].mxu1 }
 0x404   :  { %v2666_v40 = vpop.f32.mrb[25].mxu1  ;;  %2700 = vmatmul.mubr.f32.vlgmr.msra.gmra.mrb[26].mxu1 %v1441_v39  ;;  %v3007_v39 = vpack.c.bf16 %v1938_v38, %v1937_v36 }
 0x405   :  { %2703 = vmatpush3.msra.mxu1 %v3362_v53  ;;  %2704 = vmatprep.mubr.msk.f32.mxu1 %vm3221_vm1, %v3220_v0  ;;  %v1275_v53 = vpop.xlane.xlu1 %1274  ;;  %v2162_v40 = vld [vmem:[#allocation7 + $0x180] sm:$0xff] }
 0x406   :  { %2707 = vmatprep.subr.mxu1 %v3220_v0  ;;  %3115 = vrcp.f32 %v1275_v53 }
 0x408   :  { %2705 = vmatmul.mubr.msk.f32.vlgmr.msra.gmra.mrb[28].mxu1 %vm1203_vm2, %v1281_v41  ;;  %v2163_v41 = vld [vmem:[#allocation7 + $0x188] sm:$0xff] }
 0x409   :  { %2708 = vmatpush3.msra.mxu1 %v3369_v62  ;;  %2709 = vmatprep.mubr.msk.f32.mxu1 %vm3221_vm1, %v3220_v0  ;;  %v3112_v62 = vpop.eup %3111  ;;  %v3011_v42 = vpack.c.bf16 %v2163_v41, %v2162_v40 }
 0x40a   :  { %2747 = vmatprep.subr.mxu1 %v3220_v0  ;;  %v3114_v46 = vpop.eup %3113 }
 0x40b   :  { %v1289_v13 = vmul.f32 %v3114_v46, %v3422_v9  ;;  %v1698_v9 = vld [vmem:[#allocation7 + $0xf0] sm:$0xff] }
 0x40c   :  { %2710 = vmatmul.mubr.msk.f32.vlgmr.msra.gmra.mrb[30].mxu1 %vm1203_vm2, %v1283_v44  ;;  %v2975_v49 = vpack.c.bf16 %v1699_v48, %v1698_v9  ;;  %v2165_v44 = vld [vmem:[#allocation7 + $0x198] sm:$0xff]  ;;  %v2176_v48 = vld [vmem:[#allocation7 + $0x1f0] sm:$0xff] }
 0x40d   :  { %2748 = vmatpush3.msra.mxu1 %v3383_v14  ;;  %2749 = vmatprep.mubr.msk.f32.mxu1 %vm3221_vm1, %v3220_v0  ;;  %v1287_v14 = vmul.f32 %v3112_v62, %v3434_v33  ;;  %v1697_v33 = vld [vmem:[#allocation7 + $0xe8] sm:$0xff]  ;;  %v3015_v53 = vpack.c.bf16 %v2165_v44, %v2164_v43 }
 0x40e   :  { %2752 = vmatprep.subr.mxu1 %v3220_v0 }
 0x410   :  { %2750 = vmatmul.mubr.msk.f32.vlgmr.msra.gmra.mrb[32].mxu1 %vm1203_vm2, %v1285_v2  ;;  %v3116_v37 = vpop.eup %3115  ;;  %v2167_v2 = vld [vmem:[#allocation7 + $0x1a8] sm:$0xff] }
 0x411   :  { %2753 = vmatpush3.msra.mxu1 %v3394_v19  ;;  %2754 = vmatprep.mubr.msk.f32.mxu1 %vm3221_vm1, %v3220_v0  ;;  %v1291_v17 = vmul.f32 %v3116_v37, %v3438_v35  ;;  %v1696_v19 = vld [vmem:[#allocation7 + $0xe0] sm:$0xff]  ;;  %v3019_v62 = vpack.c.bf16 %v2167_v2, %v2166_v45 }
 0x412   :  { %2792 = vmatprep.subr.mxu1 %v3220_v0  ;;  %v2971_v47 = vpack.c.bf16 %v1697_v33, %v1696_v19  ;;  %v2174_v33 = vld [vmem:[#allocation7 + $0x1e0] sm:$0xff] }
 0x414   :  { %2755 = vmatmul.mubr.msk.f32.vlgmr.msra.gmra.mrb[34].mxu1 %vm1203_vm2, %v1287_v14  ;;  %2972 = vmatprep.subr.bf16.mxu0 %v2971_v47  ;;  %v2169_v14 = vld [vmem:[#allocation7 + $0x1b8] sm:$0xff] }
 0x415   :  { %2793 = vmatpush3.msra.mxu1 %v635_v6  ;;  %2794 = vmatprep.mubr.msk.f32.mxu1 %vm3221_vm1, %v3220_v0  ;;  %v3023_v46 = vpack.c.bf16 %v2169_v14, %v2168_v29  ;;  %v2170_v6 = vld [vmem:[#allocation7 + $0x1c0] sm:$0xff] }
 0x416   :  { %2797 = vmatprep.subr.mxu1 %v3220_v0  ;;  %2974 = vmatpush3.bf16.msra.mxu0 %v2971_v47  ;;  %v2175_v47 = vld [vmem:[#allocation7 + $0x1e8] sm:$0xff] }
 0x417   :  { %2976 = vmatprep.subr.bf16.mxu0 %v2975_v49  ;;  %v3035_v9 = vpack.c.bf16 %v2175_v47, %v2174_v33 }
 0x418   :  { %2795 = vmatmul.mubr.msk.f32.vlgmr.msra.gmra.mrb[36].mxu1 %vm1203_vm2, %v1289_v13  ;;  %v2171_v13 = vld [vmem:[#allocation7 + $0x1c8] sm:$0xff] }
 0x419   :  { %2798 = vmatpush3.msra.mxu1 %v641_v55  ;;  %2799 = vmatprep.mubr.msk.f32.mxu1 %vm3221_vm1, %v3220_v0  ;;  %v2256_v0 = vld [vmem:[#allocation7 + $0x210] sm:$0xff]  ;;  %v3027_v37 = vpack.c.bf16 %v2171_v13, %v2170_v6 }
 0x41a   :  { %2978 = vmatpush3.bf16.msra.mxu0 %v2975_v49  ;;  %v3043_v54 = vpack.c.bf16 %v2256_v0, %v2255_v52  ;;  %v2172_v55 = vld [vmem:[#allocation7 + $0x1d0] sm:$0xff]  ;;  %v2177_v49 = vld [vmem:[#allocation7 + $0x1f8] sm:$0xff] }
 0x41b   :  { %2980 = vmatprep.subr.bf16.mxu0 %v2979_v51  ;;  %v3039_v20 = vpack.c.bf16 %v2177_v49, %v2176_v48  ;;  %v2351_v0 = vld [vmem:[#allocation7 + $0x230] sm:$0xff] }
 0x41c   :  { %2800 = vmatmul.mubr.msk.f32.vlgmr.msra.gmra.mrb[38].mxu1 %vm1203_vm2, %v1291_v17  ;;  %3044 = vmatprep.subr.bf16.mxu1 %v3043_v54  ;;  %v2173_v17 = vld [vmem:[#allocation7 + $0x1d8] sm:$0xff] }
 0x41d   :  { %3046 = vmatpush3.bf16.msra.mxu1 %v3043_v54  ;;  %v3031_v19 = vpack.c.bf16 %v2173_v17, %v2172_v55  ;;  %v2352_v54 = vld [vmem:[#allocation7 + $0x238] sm:$0xff] }
 0x4d7   :  { %v3481_v35 = vpop.f32.mrb[26].mxu1 }
 0x4d8   :  { %v3483_v56 = vpop.f32.mrb[27].mxu1 }
 0x4db   :  { %v1607_v57 = vpop.f32.mrb[28].mxu1 }
 0x4dc   :  { %v2706_v60 = vpop.f32.mrb[29].mxu1  ;;  %2744 = vmatprep.mubr.f32.mxu0 %v1607_v57  ;;  %v3051_v57 = vpack.c.bf16 %v2352_v54, %v2351_v0 }
 0x4dd   :  { %v1298_v60 = vadd.f32 %v3117_v59, %v2482_v58 }
 0x4df   :  { %v1680_v63 = vpop.f32.mrb[30].mxu1  ;;  %v1537_v1 = vadd.f32 %v3481_v35, %v1298_v60  ;;  %v2357_v35 = vld [vmem:[#allocation7 + $0x260] sm:$0xff] }
 0x4e0   :  { %v2711_v4 = vpop.f32.mrb[31].mxu1  ;;  %2745 = vmatmul.mubr.f32.vlgmr.msra.gmra.mrb[18].mxu0 %v1680_v63 }
 0x4e1   :  { %2982 = vmatpush3.bf16.msra.mxu0 %v2979_v51  ;;  %v2258_v51 = vld [vmem:[#allocation7 + $0x220] sm:$0xff] }
 0x4e2   :  { %2984 = vmatprep.subr.bf16.mxu0 %v2983_v61  ;;  %v3047_v52 = vpack.c.bf16 %v2258_v51, %v2257_v50 }
 0x4e3   :  { %v1846_v7 = vpop.f32.mrb[32].mxu1 }
 0x4e4   :  { %v2751_v11 = vpop.f32.mrb[33].mxu1  ;;  %2789 = vmatprep.mubr.f32.mxu0 %v1846_v7  ;;  %3048 = vmatprep.subr.bf16.mxu1 %v3047_v52  ;;  %v2354_v7 = vld [vmem:[#allocation7 + $0x248] sm:$0xff] }
 0x4e5   :  { %2986 = vmatpush3.bf16.msra.mxu0 %v2983_v61  ;;  %3050 = vmatpush3.bf16.msra.mxu1 %v3047_v52  ;;  %v3118_v61 = vld [vmem:[#allocation2] sm:$0xff] }
 0x4e6   :  { %2988 = vmatprep.subr.bf16.mxu0 %v2987_v5  ;;  %3052 = vmatprep.subr.bf16.mxu1 %v3051_v57  ;;  %v1297_v63 = vadd.f32 %v3118_v61, %v2482_v58 }
 0x4e7   :  { %v1919_v15 = vpop.f32.mrb[34].mxu1 }
 0x4e8   :  { %v2756_v21 = vpop.f32.mrb[35].mxu1  ;;  %v1536_v3 = vadd.f32 %v3483_v56, %v1297_v63  ;;  %v2358_v56 = vld [vmem:[#allocation7 + $0x268] sm:$0xff] }
 0x4e9   :  { %2990 = vmatpush3.bf16.msra.mxu0 %v2987_v5  ;;  %v2353_v5 = vld [vmem:[#allocation7 + $0x240] sm:$0xff]  ;;  %v3063_v21 = vpack.c.bf16 %v2358_v56, %v2357_v35 }
 0x4ea   :  { %2992 = vmatprep.subr.bf16.mxu0 %v2991_v12 }
 0x4eb   :  { %v2085_v23 = vpop.f32.mrb[36].mxu1 }
 0x4ec   :  { %v2796_v26 = vpop.f32.mrb[37].mxu1 }
 0x4ed   :  { %2994 = vmatpush3.bf16.msra.mxu0 %v2991_v12  ;;  %v3055_v12 = vpack.c.bf16 %v2354_v7, %v2353_v5 }
 0x4ee   :  { %2996 = vmatprep.subr.bf16.mxu0 %v2995_v22 }
 0x4ef   :  { %v2158_v28 = vpop.f32.mrb[38].mxu1 }
 0x4f0   :  { %v2801_v32 = vpop.f32.mrb[39].mxu1 }
 0x4f1   :  { %2998 = vmatpush3.bf16.msra.mxu0 %v2995_v22  ;;  %v2491_v22 = vld [vmem:[#allocation7 + $0x228] ss:$0 sm:$0xff]  ;;  %v2494_v32 = vld [vmem:[#allocation7 + $0x270] ss:$0 sm:$0xff] }
 0x4f2   :  { %3000 = vmatprep.subr.bf16.mxu0 %v2999_v27 }
 0x4f5   :  { %3002 = vmatpush3.bf16.msra.mxu0 %v2999_v27 }
 0x4f6   :  { %3004 = vmatprep.subr.bf16.mxu0 %v3003_v34 }
 0x4f9   :  { %3006 = vmatpush3.bf16.msra.mxu0 %v3003_v34 }
 0x4fa   :  { %3008 = vmatprep.subr.bf16.mxu0 %v3007_v39 }
 0x4fd   :  { %3010 = vmatpush3.bf16.msra.mxu0 %v3007_v39 }
 0x4fe   :  { %3012 = vmatprep.subr.bf16.mxu0 %v3011_v42 }
 0x500   :  { %2790 = vmatmul.mubr.f32.vlgmr.msra.gmra.mrb[18].mxu0 %v1919_v15  ;;  %v2355_v15 = vld [vmem:[#allocation7 + $0x250] sm:$0xff] }
 0x501   :  { %3014 = vmatpush3.bf16.msra.mxu0 %v3011_v42  ;;  %2834 = vmatprep.mubr.f32.mxu0 %v2085_v23  ;;  %v3059_v18 = vpack.c.bf16 %v2356_v16, %v2355_v15 }
 0x502   :  { %3016 = vmatprep.subr.bf16.mxu0 %v3015_v53 }
 0x505   :  { %3018 = vmatpush3.bf16.msra.mxu0 %v3015_v53 }
 0x506   :  { %3020 = vmatprep.subr.bf16.mxu0 %v3019_v62 }
 0x509   :  { %3022 = vmatpush3.bf16.msra.mxu0 %v3019_v62 }
 0x50a   :  { %3024 = vmatprep.subr.bf16.mxu0 %v3023_v46 }
 0x50d   :  { %3026 = vmatpush3.bf16.msra.mxu0 %v3023_v46 }
 0x50e   :  { %3028 = vmatprep.subr.bf16.mxu0 %v3027_v37 }
 0x511   :  { %3030 = vmatpush3.bf16.msra.mxu0 %v3027_v37 }
 0x512   :  { %3032 = vmatprep.subr.bf16.mxu0 %v3031_v19 }
 0x515   :  { %3034 = vmatpush3.bf16.msra.mxu0 %v3031_v19 }
 0x516   :  { %3036 = vmatprep.subr.bf16.mxu0 %v3035_v9 }
 0x519   :  { %3038 = vmatpush3.bf16.msra.mxu0 %v3035_v9 }
 0x51a   :  { %3040 = vmatprep.subr.bf16.mxu0 %v3039_v20 }
 0x51d   :  { %3042 = vmatpush3.bf16.msra.mxu0 %v3039_v20 }
 0x520   :  { %2835 = vmatmul.mubr.f32.vlgmr.msra.gmra.mrb[18].mxu0 %v2158_v28 }
 0x5f3   :  { %v2836_v4 = vpop.f32.mrb[18].mxu0 }
 0x5f4   :  { %v3068_v8 = vadd.f32 %v2836_v4, %v1537_v1  ;;  %v2244_v10 = vpop.f32.mrb[19].mxu0 }
 0x5f5   :  { %v3070_v11 = vadd.f32 %v2244_v10, %v1536_v3 }
 0x5f6   :  { %v2447_v36 = vmul.f32 2.0, %v3068_v8 }
 0x5f7   :  { %2845 = vmatprep.mubr.msk.f32.mxu1 %vm174_vm0, %v3070_v11  ;;  %v2446_v40 = vmul.f32 2.0, %v3070_v11 }
 0x5f8   :  { %2846 = vmatmul.mubr.msk.f32.vlgmr.msra.gmra.mrb[40].mxu1 %vm174_vm0, %v3068_v8 }
 0x5f9   :  { %3054 = vmatpush3.bf16.msra.mxu1 %v3051_v57 }
 0x5fa   :  { %3056 = vmatprep.subr.bf16.mxu1 %v3055_v12 }
 0x5fd   :  { %3058 = vmatpush3.bf16.msra.mxu1 %v3055_v12 }
 0x5fe   :  { %3060 = vmatprep.subr.bf16.mxu1 %v3059_v18 }
 0x601   :  { %3062 = vmatpush3.bf16.msra.mxu1 %v3059_v18 }
 0x602   :  { %3064 = vmatprep.subr.bf16.mxu1 %v3063_v21 }
 0x605   :  { %3066 = vmatpush3.bf16.msra.mxu1 %v3063_v21 }
 0x6cb   :  { %v2847_v23 = vpop.f32.mrb[40].mxu1 }
 0x6cc   :  { %v2342_v24 = vadd.f32 %v2847_v23, %v2491_v22  ;;  %v2336_v25 = vpop.f32.mrb[41].mxu1 }
 0x6cd   :  { %v2337_v26 = vadd.f32 %v2491_v22, %v2336_v25 }
 0x6ce   :  { %v2348_v27 = vmul.f32 0.01, %v2342_v24  ;;  %vm2346_vm3 = vcmp.ge.f32.partialorder %v2342_v24, 0.0 }
 0x6cf   :  { %vm2345_vm4 = vcmp.ge.f32.partialorder %v2337_v26, 0.0  ;;  %v2347_v28 = vmul.f32 0.01, %v2337_v26 }
 0x6d0   :  { %v2350_v31 = vsel %vm2346_vm3, %v2342_v24, %v2348_v27 }
 0x6d1   :  { %v2349_v30 = vsel %vm2345_vm4, %v2337_v26, %v2347_v28 }
 0x6d2   :  { %2864 = vmatprep.mubr.msk.f32.mxu1 %vm2364_vm5, %v2349_v30 }
 0x6d3   :  { %2865 = vmatmul.mubr.msk.f32.vlgmr.msra.gmra.mrb[42].mxu1 %vm2364_vm5, %v2350_v31 }
 0x7a6   :  { %v2866_v34 = vpop.f32.mrb[42].mxu1 }
 0x7a7   :  { %v2443_v38 = vadd.f32 %v2866_v34, %v2494_v32  ;;  %v2437_v39 = vpop.f32.mrb[43].mxu1 }
 0x7a8   :  { %v2438_v41 = vadd.f32 %v2494_v32, %v2437_v39 }
 0x7a9   :  { %v2449_v42 = vadd.f32 %v2447_v36, %v2443_v38 }
 0x7aa   :  { %v2448_v43 = vadd.f32 %v2446_v40, %v2438_v41 }
 0x7ab   :  { %2451 = vst.msk [vmem:[#allocation8 + $0x8] sm:$0xff] %vm174_vm0, %v2449_v42 }
 0x7ac   :  { %2450 = vst.msk [vmem:[#allocation8] sm:$0xff] %vm174_vm0, %v2448_v43 }
 0x7ad   :  { %3196 = shalt.err (!%p3193_p0)
}
 0x7ae   :  { %s3197_s27 = scalar_lea.hbm %s3509_s3, 256 }
 0x7af   :  { %p3198_p1 = scmp.ne.s32.totalorder %s3509_s3, %s3197_s27  ;;  %p3201_p2 = scmp.lt.u32.totalorder %s3197_s27, %s3509_s3 }
 0x7b1   :  { %p3203_p3 = pnand %p3201_p2, %p3198_p1 }
 0x7b3   :  { %3206 = shalt.err (!%p3203_p3)
}
 0x7b4   :  { %2463 = dma.vmem_to_hbm [thread:$0]  %s2458_s23, 256, %s3509_s3, [#allocation4], %s3217_s1, %s3217_s1, %s3218_s9  }
 0x7b5   :  { %3211 = dma.done.wait [#allocation4], 256  }
 0x7b6   :  { %3212 = vsyncadd [#allocation4], 4294967040 }
 0x7b7   :  { %2467 = vsyncpa [#allocation3], 1 }
 0x7b8   :  { %2468 = vsyncpa [#allocation6], 1 }
 0x7b9   :  { %2469 = vsyncpa [#allocation4], 1 }

</bundles_post_ra>
